<compile_context>
chip_gen: v7x
topology: tpu7x:2x2x1
jax: 0.10.0
libtpu: 0.0.40
codegen_flags: <defaults>
</compile_context>

<pallas_src>
import functools

import jax
import jax.numpy as jnp
from jax.experimental import pallas as pl
from jax.experimental.pallas import tpu as pltpu


# ------------------------------ Pallas kernel ------------------------------ #
def _conv_forward_kernel(x_ref, p_ref, o_ref, *, geom, act):
    """x_ref: (Bb, T*L) block; p_ref: packed params (R, W); o_ref: (Bb, O)."""
    TL, C1L1, C2L2, O, oA1, ob1, oA2, ob2, oWf, obf = geom
    f32 = jnp.float32

    x = x_ref[...].astype(f32)                                   # (Bb, T*L)

    # conv1: Conv1d(T, T//2, 3, stride=2, padding=1) as one dense matmul.
    a1 = p_ref[oA1:oA1 + TL, 0:C1L1]                             # (T*L, C1*L1)
    b1 = p_ref[ob1:ob1 + 1, 0:C1L1]                              # (1, C1*L1)
    h1 = jnp.dot(x, a1, preferred_element_type=f32) + b1         # (Bb, C1*L1)

    # conv2 + relu: Conv1d(T//2, 20, 3, stride=2, padding=1).
    a2 = p_ref[oA2:oA2 + C1L1, 0:C2L2]                           # (C1*L1, C2*L2)
    b2 = p_ref[ob2:ob2 + 1, 0:C2L2]                              # (1, C2*L2)
    h2 = jnp.maximum(jnp.dot(h1, a2, preferred_element_type=f32) + b2, 0.0)

    # fc on the per-sample flatten h2.view(1, -1)  (columns are c*L2 + p,
    # matching PyTorch's contiguous (C2, L2) flatten).
    wf = p_ref[oWf:oWf + C2L2, 0:O]                              # (C2*L2, O)
    bf = p_ref[obf:obf + 1, 0:O]                                 # (1, O)
    out = jnp.dot(h2, wf, preferred_element_type=f32) + bf       # (Bb, O)

    if act == "sigmoid":
        out = jax.nn.sigmoid(out)
    elif act == "log_softmax":
        out = out - jax.nn.logsumexp(out, axis=-1, keepdims=True)
    # act == "none": raw logits.
    # TODO(synk): PyTorch forward returns None when sigmoid=False and
    # softmax=False; we return the raw fc logits instead.
    o_ref[...] = out.astype(o_ref.dtype)


# ------------------------------ weight prep -------------------------------- #
def _unrolled_conv_matrix(w, L_in, L_out):
    """Exact dense matrix A for Conv1d(kernel=3, stride=2, padding=1).

    A[(c_in * L_in + i), (c_out * L_out + j)] = w[c_out, c_in, i - 2*j + 1]
    when that tap index is in [0, 3), else 0.  No summation -> exact.
    """
    c_out, c_in, _ = w.shape
    i = jnp.arange(L_in)[:, None]                  # (L_in, 1)
    j = jnp.arange(L_out)[None, :]                 # (1, L_out)
    k = i - 2 * j + 1                              # (L_in, L_out)
    valid = (k >= 0) & (k <= 2)
    kc = jnp.clip(k, 0, 2)
    w_g = w[:, :, kc]                              # (C_out, C_in, L_in, L_out)
    w_g = jnp.where(valid[None, None, :, :], w_g, 0.0)
    a = jnp.transpose(w_g, (1, 2, 0, 3))           # (C_in, L_in, C_out, L_out)
    return a.reshape(c_in * L_in, c_out * L_out).astype(jnp.float32)


def _pack_rows(mats):
    """Pack 2D matrices into one f32 buffer; each block 8-row aligned."""
    width = max(int(m.shape[1]) for m in mats)
    blocks, offsets, r = [], [], 0
    for m in mats:
        rows = int(m.shape[0])
        rpad = ((rows + 7) // 8) * 8
        blk = jnp.zeros((rpad, width), jnp.float32)
        blk = blk.at[:rows, : m.shape[1]].set(m.astype(jnp.float32))
        blocks.append(blk)
        offsets.append(r)
        r += rpad
    return jnp.concatenate(blocks, axis=0), tuple(offsets)


def prepare_params(params, T, L):
    """One-time transform of PyTorch-style parameters into the packed buffer."""
    w1, b1, w2, b2, wf, bf = params
    C1, C2 = T // 2, 20
    L1, L2 = L // 2, L // 4
    out_features = wf.shape[0]

    A1 = _unrolled_conv_matrix(w1, L, L1)            # (T*L,   C1*L1)
    A2 = _unrolled_conv_matrix(w2, L1, L2)           # (C1*L1, C2*L2)
    b1r = jnp.repeat(b1, L1)[None, :]                # (1, C1*L1)
    b2r = jnp.repeat(b2, L2)[None, :]                # (1, C2*L2)
    wfT = wf.T                                       # (C2*L2, O)
    bfr = bf[None, :]                                # (1, O)

    packed, offsets = _pack_rows([A1, b1r, A2, b2r, wfT, bfr])
    meta = {"C1L1": C1 * L1, "C2L2": C2 * L2, "O": out_features,
            "offsets": offsets}
    return packed, meta


# ------------------------------ wrapper (JAX) ------------------------------ #
def conv_forward(z, packed, meta, sigmoid=True, softmax=False):
    """Forward of `conv` applied independently to each sample of z (B, T, L)."""
    B, T, L = z.shape
    TL = T * L
    O = meta["O"]
    geom = (TL, meta["C1L1"], meta["C2L2"], O) + tuple(meta["offsets"])

    if sigmoid:
        act = "sigmoid"
    elif softmax:
        act = "log_softmax"
    else:
        act = "none"

    Bb = 8 if B % 8 == 0 else B                      # block of samples per step
    xflat = z.reshape(B, TL).astype(jnp.float32)     # contiguous, free reshape

    return pl.pallas_call(
        functools.partial(_conv_forward_kernel, geom=geom, act=act),
        out_shape=jax.ShapeDtypeStruct((B, O), jnp.float32),
        grid=(B // Bb,),
        in_specs=[
            pl.BlockSpec((Bb, TL), lambda i: (i, 0)),        # per-block samples
            pl.BlockSpec(packed.shape, lambda i: (0, 0)),    # resident params
        ],
        out_specs=pl.BlockSpec((Bb, O), lambda i: (i, 0)),
        compiler_params=pltpu.CompilerParams(
            dimension_semantics=("parallel",)),
    )(xflat, packed)


def init_params(key, T, in_features, out_features):
    """Deterministic PyTorch-style uniform(-1/sqrt(fan_in), 1/sqrt(fan_in)) init."""
    F = 20 * in_features // T // 4
    ks = jax.random.split(key, 6)

    def u(k, shape, fan_in):
        bound = 1.0 / jnp.sqrt(jnp.float32(fan_in))
        return jax.random.uniform(k, shape, jnp.float32, -bound, bound)

    w1 = u(ks[0], (T // 2, T, 3), T * 3)
    b1 = u(ks[1], (T // 2,), T * 3)
    w2 = u(ks[2], (20, T // 2, 3), (T // 2) * 3)
    b2 = u(ks[3], (20,), (T // 2) * 3)
    wf = u(ks[4], (out_features, F), F)
    bf = u(ks[5], (out_features,), F)
    return w1, b1, w2, b2, wf, bf


# --------------------------------- main ------------------------------------ #
if __name__ == "__main__":
    T, L, out_features = 8, 16, 10          # per-sample shapes; in_features = T*L
    in_features = T * L
    B = 16                                  # batch of independent samples

    key = jax.random.PRNGKey(0)
    kz, kp = jax.random.split(key)
    z = jax.random.normal(kz, (B, T, L), jnp.float32)
    params = init_params(kp, T, in_features, out_features)
    packed, meta = prepare_params(params, T, L)   # one-time weight transform

    fwd = jax.jit(lambda z_, p_: conv_forward(z_, p_, meta,
                                              sigmoid=True, softmax=False))
    out = jax.block_until_ready(fwd(z, packed))

    # Pure-JAX reference (per-sample module forward, batched).
    def ref(z, params):
        w1, b1, w2, b2, wf, bf = params
        dn = ("NCH", "OIH", "NCH")
        h1 = jax.lax.conv_general_dilated(z, w1, (2,), [(1, 1)],
                                          dimension_numbers=dn) + b1[None, :, None]
        h2 = jax.nn.relu(
            jax.lax.conv_general_dilated(h1, w2, (2,), [(1, 1)],
                                         dimension_numbers=dn) + b2[None, :, None])
        return jax.nn.sigmoid(h2.reshape(z.shape[0], -1) @ wf.T + bf[None, :])

    r = jax.block_until_ready(ref(z, params))
    assert out.shape == (B, out_features)
    assert jnp.allclose(out, r, atol=1e-3, rtol=1e-3)
    print("KERNEL_OK")
</pallas_src>

<mosaic_0001>
module attributes {stable_mosaic.version = 11 : i64} {
  func.func @_conv_forward_kernel(%arg0: i32, %arg1: memref<8x128xf32, #tpu.memory_space<vmem>>, %arg2: memref<264x80xf32, #tpu.memory_space<vmem>>, %arg3: memref<8x10xf32, #tpu.memory_space<vmem>>) attributes {dimension_semantics = [#tpu.dimension_semantics<parallel>], iteration_bounds = array<i64: 2>, scalar_prefetch = 0 : i64, scratch_operands = 0 : i64, tpu.core_type = #tpu.core_type<tc>, window_params = [{transform_indices = @transform_0, window_bounds = array<i64: 8, 128>}, {pipeline_mode = #tpu.pipeline_mode<synchronous>, transform_indices = @transform_1, window_bounds = array<i64: 264, 80>}, {transform_indices = @transform_2, window_bounds = array<i64: 8, 10>}]} {
    %c0 = arith.constant 0 : index
    %c0_0 = arith.constant 0 : index
    %0 = vector.load %arg1[%c0, %c0_0] : memref<8x128xf32, #tpu.memory_space<vmem>>, vector<8x128xf32>
    %c0_1 = arith.constant 0 : index
    %c0_2 = arith.constant 0 : index
    %1 = vector.load %arg2[%c0_1, %c0_2] : memref<264x80xf32, #tpu.memory_space<vmem>>, vector<128x32xf32>
    %c128 = arith.constant 128 : index
    %c0_3 = arith.constant 0 : index
    %2 = vector.load %arg2[%c128, %c0_3] : memref<264x80xf32, #tpu.memory_space<vmem>>, vector<1x32xf32>
    %cst = arith.constant dense<0.000000e+00> : vector<8x32xf32>
    %3 = tpu.matmul %0, %1, %cst {dimension_numbers = #tpu.dot_dimension_numbers<[1], [0], [0], [1], [0, 0, 1, 1], [], []>} : vector<8x128xf32>, vector<128x32xf32>, vector<8x32xf32> -> vector<8x32xf32>
    %4 = vector.broadcast %2 : vector<1x32xf32> to vector<8x32xf32>
    %5 = arith.addf %3, %4 : vector<8x32xf32>
    %c136 = arith.constant 136 : index
    %c0_4 = arith.constant 0 : index
    %6 = vector.load %arg2[%c136, %c0_4] : memref<264x80xf32, #tpu.memory_space<vmem>>, vector<32x80xf32>
    %c168 = arith.constant 168 : index
    %c0_5 = arith.constant 0 : index
    %7 = vector.load %arg2[%c168, %c0_5] : memref<264x80xf32, #tpu.memory_space<vmem>>, vector<1x80xf32>
    %cst_6 = arith.constant dense<0.000000e+00> : vector<8x80xf32>
    %8 = tpu.matmul %5, %6, %cst_6 {dimension_numbers = #tpu.dot_dimension_numbers<[1], [0], [0], [1], [0, 0, 1, 1], [], []>} : vector<8x32xf32>, vector<32x80xf32>, vector<8x80xf32> -> vector<8x80xf32>
    %9 = vector.broadcast %7 : vector<1x80xf32> to vector<8x80xf32>
    %10 = arith.addf %8, %9 : vector<8x80xf32>
    %cst_7 = arith.constant 0.000000e+00 : f32
    %11 = vector.broadcast %cst_7 : f32 to vector<8x80xf32>
    %12 = arith.maximumf %10, %11 : vector<8x80xf32>
    %c176 = arith.constant 176 : index
    %c0_8 = arith.constant 0 : index
    %13 = vector.load %arg2[%c176, %c0_8] : memref<264x80xf32, #tpu.memory_space<vmem>>, vector<80x10xf32>
    %c256 = arith.constant 256 : index
    %c0_9 = arith.constant 0 : index
    %14 = vector.load %arg2[%c256, %c0_9] : memref<264x80xf32, #tpu.memory_space<vmem>>, vector<1x10xf32>
    %cst_10 = arith.constant dense<0.000000e+00> : vector<8x10xf32>
    %15 = tpu.matmul %12, %13, %cst_10 {dimension_numbers = #tpu.dot_dimension_numbers<[1], [0], [0], [1], [0, 0, 1, 1], [], []>} : vector<8x80xf32>, vector<80x10xf32>, vector<8x10xf32> -> vector<8x10xf32>
    %16 = vector.broadcast %14 : vector<1x10xf32> to vector<8x10xf32>
    %17 = arith.addf %15, %16 : vector<8x10xf32>
    %18 = arith.negf %17 : vector<8x10xf32>
    %19 = math.exp %18 : vector<8x10xf32>
    %cst_11 = arith.constant 1.000000e+00 : f32
    %20 = vector.broadcast %cst_11 : f32 to vector<8x10xf32>
    %21 = arith.addf %20, %19 : vector<8x10xf32>
    %22 = arith.divf %20, %21 : vector<8x10xf32>
    %c0_12 = arith.constant 0 : index
    %c0_13 = arith.constant 0 : index
    %23 = vector.load %arg3[%c0_12, %c0_13] : memref<8x10xf32, #tpu.memory_space<vmem>>, vector<8x10xf32>
    tpu.vector_store %arg3[%c0_12, %c0_13], %22 {strides = array<i32>} : memref<8x10xf32, #tpu.memory_space<vmem>>, vector<8x10xf32>,
    return
  }
  func.func @transform_0(%arg0: i32) -> (i32, i32) {
    %c0_i32 = arith.constant 0 : i32
    %c0_i32_0 = arith.constant 0 : i32
    return %arg0, %c0_i32 : i32, i32
  }
  func.func @transform_1(%arg0: i32) -> (i32, i32) {
    %c0_i32 = arith.constant 0 : i32
    %c0_i32_0 = arith.constant 0 : i32
    %c0_i32_1 = arith.constant 0 : i32
    return %c0_i32, %c0_i32_0 : i32, i32
  }
  func.func @transform_2(%arg0: i32) -> (i32, i32) {
    %c0_i32 = arith.constant 0 : i32
    %c0_i32_0 = arith.constant 0 : i32
    return %arg0, %c0_i32 : i32, i32
  }
}

</mosaic_0001>

<bundles_post_ra>
// kernel: _lambda_.1
= control target key start
LH: loop header
LB: loop body
LE: loop exit
PB: predicated region body
PF: predicated region fallthrough
CT: control target
= control target key end

     0   :  { %7 = vsyncpa [#allocation3], 0  ;;  %s997_s0 = inlined_call_operand.vmem [shape: f32[16,128], index: 0, kind: input, shape index: {}]   ;;  %s998_s1 = inlined_call_operand.vmem [shape: f32[264,80], index: 1, kind: input, shape index: {}]   ;;  %s999_s2 = inlined_call_operand.hbm [shape: f32[16,10], index: 2, kind: output, shape index: {}]  }
   0x1   :  { %9 = vsyncpa [#allocation3 + $0x1], 0  ;;  %s777_s9 = smov 0   ;;  %s779_s10 = smov 0  }
   0x2   :  { %s781_s11 = smov 0   ;;  %s783_s12 = smov 0  }
   0x3 LB: > { %s798_s13 = sadd.s32 4294967295, %s756_s12   ;;  %s485_s14 = sadd.s32 4294967294, %s756_s12   ;;  %s756_s12 = sphi %s783_s12, %s1005_s12   ;;  %s752_s11 = sphi %s781_s11, %s1004_s11   ;;  %s748_s10 = sphi %s779_s10, %s1003_s10   ;;  %s744_s9 = sphi %s777_s9, %s1002_s9  }
   0x4   : > { %s802_s15 = sadd.s32 1, %s756_s12   ;;  %s69_s16 = sadd.s32 1, %s752_s11 }
   0x5   : > { %s66_s17 = ssub.s32 %s756_s12, %s802_s15  ;;  %p79_p0 = scmp.ne.s32.totalorder %s752_s11, %s748_s10 }
   0x6   : > { %p67_p1 = scmp.eq.s32.totalorder %s66_s17, 0  ;;  %p80_p2 = scmp.eq.s32.totalorder %s798_s13, 1 }
   0x7   : > { %p85_p3 = scmp.ne.s32.totalorder %s748_s10, %s744_s9  ;;  %p86_p4 = scmp.eq.s32.totalorder %s485_s14, 1 }
   0x8   : > { %s813_s18 = scalar_select %p67_p1, %s752_s11, %s69_s16  }
   0x9   : > { %p815_p5 = por %p80_p2, %p79_p0  ;;  %p819_p6 = por %p86_p4, %p85_p3 }
   0xa   : > { %p488_p7 = scmp.ge.s32.totalorder %s756_s12, 1  ;;  %p114_p8 = scmp.lt.s32.totalorder %s756_s12, 3 }
   0xc   : > { %p115_p9 = pnand %p488_p7, %p114_p8 }
   0xd   : > { %v140_v0 = vld [vmem:[%s998_s1] sm:$0xff] (!%p115_p9)  ;;  %v141_v1 = vld [vmem:[%s998_s1 + $0x8] sm:$0xff] (!%p115_p9)  ;;  %v142_v2 = vld [vmem:[%s998_s1 + $0x10] sm:$0xff] (!%p115_p9)  ;;  %v758_v3 = vmov (!%p115_p9), 0.0|0.0   ;;  %vm759_vm0 = vmmov (!%p115_p9), 0   ;;  %v760_v6 = vmov (!%p115_p9), 0.0  }
   0xe   : > { %118 = sbr.rel (%p115_p9) target bundleno = 731 (0x2db), region = 28  ;;  %603 = vmatprep.subr.bf16.mxu0 (!%p115_p9), %v758_v3  ;;  %v604_v4 = vpack.c.bf16 (!%p115_p9), %v141_v1, %v140_v0  ;;  %v143_v5 = vld [vmem:[%s998_s1 + $0x18] sm:$0xff] (!%p115_p9)  ;;  %566 = vmatprep.mubr.msk.f32.mxu0 (!%p115_p9), %vm759_vm0, %v760_v6  ;;  %v144_v8 = vld [vmem:[%s998_s1 + $0x20] sm:$0xff] (!%p115_p9)  ;;  %v145_v9 = vld [vmem:[%s998_s1 + $0x28] sm:$0xff] (!%p115_p9)  ;;  %p135_p10 = scmp.lt.s32.totalorder (!%p115_p9), %s798_s13, 1  ;;  %vm240_vm1 = vcmask (!%p115_p9), 261120  }
   0xf   : > { %627 = vmatprep.subr.bf16.mxu1 (!%p115_p9), %v758_v3  ;;  %577 = vmatprep.mubr.msk.f32.mxu1 (!%p115_p9), %vm759_vm0, %v760_v6  ;;  %v607_v7 = vpack.c.bf16 (!%p115_p9), %v143_v5, %v142_v2  ;;  %v231_v10 = vld [vmem:[%s998_s1 + $0x88] sm:$0xff] (!%p115_p9)  ;;  %v232_v11 = vld [vmem:[%s998_s1 + $0x90] sm:$0xff] (!%p115_p9)  ;;  %v610_v13 = vpack.c.bf16 (!%p115_p9), %v145_v9, %v144_v8  ;;  %v147_v15 = vld [vmem:[%s998_s1 + $0x38] sm:$0xff] (!%p115_p9)  ;;  %vm330_vm2 = vcmask (!%p115_p9), 654336   ;;  %s132_s7 = sand.u32 (!%p115_p9), 1, %s748_s10   ;;  %s498_s14 = sshll.u32 (!%p115_p9), %s798_s13, 7 }
  0x10   : > { %605 = vmatpush3.bf16.msra.mxu0 (!%p115_p9), %v604_v4  ;;  %v628_v12 = vpack.c.bf16 (!%p115_p9), %v232_v11, %v231_v10  ;;  %v146_v14 = vld [vmem:[%s998_s1 + $0x30] sm:$0xff] (!%p115_p9)  ;;  %v148_v17 = vld [vmem:[%s998_s1 + $0x40] sm:$0xff] (!%p115_p9)  ;;  %v149_v18 = vld [vmem:[%s998_s1 + $0x48] sm:$0xff] (!%p115_p9)  ;;  %s489_s8 = sshll.u32 (!%p115_p9), %s132_s7, 3  ;;  %vm410_vm3 = vcmask (!%p115_p9), 80896   ;;  %s413_s24 = scalar_lea.sflag (!%p115_p9), [#allocation3], %s132_s7 }
  0x11   : > { %606 = vmatprep.subr.bf16.mxu0 (!%p115_p9), %v758_v3  ;;  %v613_v16 = vpack.c.bf16 (!%p115_p9), %v147_v15, %v146_v14  ;;  %v616_v19 = vpack.c.bf16 (!%p115_p9), %v149_v18, %v148_v17  ;;  %v150_v20 = vld [vmem:[%s998_s1 + $0x50] sm:$0xff] (!%p115_p9)  ;;  %v151_v21 = vld [vmem:[%s998_s1 + $0x58] sm:$0xff] (!%p115_p9)  ;;  %v152_v23 = vld [vmem:[%s998_s1 + $0x60] sm:$0xff] (!%p115_p9)  ;;  %s134_s16 = scalar_lea.vmem (!%p115_p9), [#allocation2], %s489_s8 }
  0x12   : > { %629 = vmatpush3.bf16.msra.mxu1 (!%p115_p9), %v628_v12  ;;  %v619_v22 = vpack.c.bf16 (!%p115_p9), %v151_v21, %v150_v20  ;;  %v153_v24 = vld [vmem:[%s998_s1 + $0x68] sm:$0xff] (!%p115_p9)  ;;  %v154_v26 = vld [vmem:[%s998_s1 + $0x70] sm:$0xff] (!%p115_p9)  ;;  %v155_v27 = vld [vmem:[%s998_s1 + $0x78] sm:$0xff] (!%p115_p9) }
  0x13   : > { %630 = vmatprep.subr.bf16.mxu1 (!%p115_p9), %v758_v3  ;;  %v622_v25 = vpack.c.bf16 (!%p115_p9), %v153_v24, %v152_v23  ;;  %v625_v28 = vpack.c.bf16 (!%p115_p9), %v155_v27, %v154_v26  ;;  %v233_v30 = vld [vmem:[%s998_s1 + $0x98] sm:$0xff] (!%p115_p9)  ;;  %v234_v31 = vld [vmem:[%s998_s1 + $0xa0] sm:$0xff] (!%p115_p9)  ;;  %v315_v33 = vld [vmem:[%s998_s1 + $0xb0] sm:$0xff] (!%p115_p9) }
  0x14   : > { %608 = vmatpush3.bf16.msra.mxu0 (!%p115_p9), %v607_v7  ;;  %v631_v32 = vpack.c.bf16 (!%p115_p9), %v234_v31, %v233_v30  ;;  %v316_v34 = vld [vmem:[%s998_s1 + $0xb8] sm:$0xff] (!%p115_p9)  ;;  %v491_v35 = vld [vmem:[%s998_s1 + $0x80] ss:$0 sm:$0xff] (!%p115_p9)  ;;  %v318_v41 = vld [vmem:[%s998_s1 + $0xc8] sm:$0xff] (!%p115_p9) }
  0x15   : > { %609 = vmatprep.subr.bf16.mxu0 %v758_v3  ;;  %s136_s6 = scalar_select %p135_p10, %s798_s13, 1  ;;  %v634_v37 = vpack.c.bf16 %v316_v34, %v315_v33  ;;  %v317_v40 = vld [vmem:[%s998_s1 + $0xc0] sm:$0xff]  ;;  %v319_v43 = vld [vmem:[%s998_s1 + $0xd0] sm:$0xff]  ;;  %v320_v44 = vld [vmem:[%s998_s1 + $0xd8] sm:$0xff] }
  0x16   : > { %632 = vmatpush3.bf16.msra.mxu1 %v631_v32  ;;  %v637_v42 = vpack.c.bf16 %v318_v41, %v317_v40  ;;  %v640_v45 = vpack.c.bf16 %v320_v44, %v319_v43  ;;  %v321_v46 = vld [vmem:[%s998_s1 + $0xe0] sm:$0xff]  ;;  %v322_v47 = vld [vmem:[%s998_s1 + $0xe8] sm:$0xff]  ;;  %v323_v49 = vld [vmem:[%s998_s1 + $0xf0] sm:$0xff]  ;;  %s761_s13 = smov [#allocation2]  }
  0x17   : > { %s490_s17 = sshll.u32 %s136_s6, 3  ;;  %633 = vmatprep.subr.bf16.mxu1 %v758_v3  ;;  %v643_v48 = vpack.c.bf16 %v322_v47, %v321_v46  ;;  %v324_v50 = vld [vmem:[%s998_s1 + $0xf8] sm:$0xff]  ;;  %v492_v52 = vld [vmem:[%s998_s1 + $0xa8] ss:$0 sm:$0xff]  ;;  %v494_v57 = vld [vmem:[%s998_s1 + $0x100] ss:$0 sm:$0xff] }
  0x18   : > { %611 = vmatpush3.bf16.msra.mxu0 %v610_v13  ;;  %s138_s23 = scalar_lea.vmem %s997_s0, %s490_s17  ;;  %v646_v51 = vpack.c.bf16 %v324_v50, %v323_v49  ;;  %s426_s17 = sshll.u32 %s134_s16, 4  ;;  %s957_s17 = int_to_ptr.vmem [resolvable:$true] %s426_s17 }
  0x19   : > { %612 = vmatprep.subr.bf16.mxu0 %v758_v3  ;;  %v139_v29 = vld [vmem:[%s138_s23] sm:$0xff]  ;;  %s955_s23 = scalar_lea.hbm %s999_s2, %s498_s14  ;;  %s694_s25 = scalar_lea.vmem %s957_s17, 128 }
  0x1a   : > { %p695_p11 = scmp.ne.s32.totalorder %s957_s17, %s694_s25  ;;  %s698_s26 = sshll.u32 %s761_s13, 4  ;;  %s699_s26 = int_to_ptr.vmem [resolvable:$false] %s698_s26 }
  0x1b   : > { %s700_s27 = scalar_lea.vmem %s699_s26, 256  ;;  %p701_p0 = scmp.lt.s32.totalorder %s957_s17, %s699_s26 }
  0x1c   : > { %614 = vmatpush3.bf16.msra.mxu0 %v613_v16  ;;  %p696_p12 = pnand %p695_p11, %p815_p5  ;;  %p702_p1 = scmp.lt.s32.totalorder %s700_s27, %s694_s25 }
  0x1d   : > { %615 = vmatprep.subr.bf16.mxu0 %v758_v3 }
  0x1e   : > { %p697_p13 = pneg %p696_p12  ;;  %p703_p2 = por %p702_p1, %p701_p0 }
  0x20   : > { %617 = vmatpush3.bf16.msra.mxu0 %v616_v19  ;;  %p704_p3 = pnand %p703_p2, %p697_p13 }
  0x21   : > { %618 = vmatprep.subr.bf16.mxu0 %v758_v3 }
  0x24   : > { %620 = vmatpush3.bf16.msra.mxu0 %v619_v22 }
  0x25   : > { %621 = vmatprep.subr.bf16.mxu0 %v758_v3 }
  0x28   : > { %623 = vmatpush3.bf16.msra.mxu0 %v622_v25 }
  0x29   : > { %624 = vmatprep.subr.bf16.mxu0 %v758_v3 }
  0x2c   : > { %626 = vmatpush3.bf16.msra.mxu0 %v625_v28 }
  0x2f   : > { %567 = vmatmul.mubr.f32.vlgmr.msra.gmra.mrb[0].mxu0 %v139_v29 }
 0x102   : > { %v227_v36 = vpop.f32.mrb[0].mxu0 }
 0x103   : > { %v228_v38 = vadd.f32 %v491_v35, %v227_v36  ;;  %v568_v39 = vpop.f32.mrb[1].mxu0 }
 0x105   : > { %578 = vmatmul.mubr.msk.f32.vlgmr.msra.gmra.mrb[0].mxu1 %vm240_vm1, %v228_v38 }
 0x106   : > { %635 = vmatpush3.bf16.msra.mxu1 %v634_v37  ;;  %600 = vmatprep.mubr.msk.f32.mxu1 %vm759_vm0, %v760_v6 }
 0x107   : > { %636 = vmatprep.subr.bf16.mxu1 %v758_v3 }
 0x10a   : > { %638 = vmatpush3.bf16.msra.mxu1 %v637_v42 }
 0x10b   : > { %639 = vmatprep.subr.bf16.mxu1 %v758_v3 }
 0x10e   : > { %641 = vmatpush3.bf16.msra.mxu1 %v640_v45 }
 0x10f   : > { %642 = vmatprep.subr.bf16.mxu1 %v758_v3 }
 0x112   : > { %644 = vmatpush3.bf16.msra.mxu1 %v643_v48 }
 0x113   : > { %645 = vmatprep.subr.bf16.mxu1 %v758_v3 }
 0x116   : > { %647 = vmatpush3.bf16.msra.mxu1 %v646_v51 }
 0x1d8   : > { %v310_v53 = vpop.f32.mrb[0].mxu1 }
 0x1d9   : > { %v311_v54 = vadd.f32 %v492_v52, %v310_v53  ;;  %v579_v55 = vpop.f32.mrb[1].mxu1 }
 0x1db   : > { %v314_v56 = vmax.f32 %v311_v54, 0.0 }
 0x1dd   : > { %601 = vmatmul.mubr.msk.f32.vlgmr.msra.gmra.mrb[2].mxu1 %vm330_vm2, %v314_v56 }
 0x2b0   : > { %v400_v58 = vpop.f32.mrb[2].mxu1 }
 0x2b1   : > { %v401_v59 = vadd.f32 %v494_v57, %v400_v58  ;;  %v602_v60 = vpop.f32.mrb[3].mxu1 }
 0x2b3   : > { %v496_v61 = vmul.f32 -1.442695, %v401_v59 }
 0x2b5   : > { %690 = vpow2.f32 %v496_v61 }
 0x2bf   : > { %v691_v62 = vpop.eup %690 }
 0x2c0   : > { %v407_v63 = vadd.f32 1.0, %v691_v62 }
 0x2c2   : > { %692 = vrcp.f32 %v407_v63 }
 0x2cc   : > { %v693_v0 = vpop.eup %692 }
 0x2cd   : > { %411 = vst.msk [vmem:[%s134_s16] sm:$0xff] %vm410_vm3, %v693_v0 }
 0x2ce   : > { %707 = shalt.err (!%p704_p3)
}
 0x2cf   : > { %s708_s28 = scalar_lea.hbm %s955_s23, 128  ;;  %s712_s3 = scalar_lea.hbm %s999_s2, 256 }
 0x2d0   : > { %p709_p4 = scmp.ne.s32.totalorder %s955_s23, %s708_s28  ;;  %p713_p9 = scmp.lt.u32.totalorder %s955_s23, %s999_s2 }
 0x2d1   : > { %p714_p10 = scmp.lt.u32.totalorder %s712_s3, %s708_s28  ;;  %p716_p12 = scmp.lt.u32.totalorder %s708_s28, %s955_s23 }
 0x2d2   : > { %p710_p7 = pnand %p709_p4, %p815_p5 }
 0x2d3   : > { %p715_p11 = por %p714_p10, %p713_p9 }
 0x2d4   : > { %p711_p8 = pneg %p710_p7 }
 0x2d5   : > { %p717_p13 = por %p716_p12, %p715_p11 }
 0x2d7   : > { %p718_p0 = pnand %p717_p13, %p711_p8 }
 0x2d9   : > { %721 = shalt.err (!%p718_p0)
}
 0x2da   : > { %648 = dma.vmem_to_hbm [thread:$0]  (%p815_p5), %s957_s17, 128, %s955_s23, %s413_s24  }
 0x2db PF: > { %p654_p1 = scmp.ge.s32.totalorder %s756_s12, 2  ;;  %s438_s6 = sand.u32 1, %s744_s9  }
 0x2dc   : > { %s439_s7 = scalar_lea.sflag [#allocation3], %s438_s6 }
 0x2dd   : > { %p651_p2 = pnand %p654_p1, %p819_p6 }
 0x2df   : > { %739 = dma.done.wait (!%p651_p2), %s439_s7, 128  }
 0x2e0   : > { %741 = vsyncadd (!%p651_p2), %s439_s7, 4294967168  ;;  %p12_p3 = scmp.ge.s32.totalorder %s802_s15, 4   ;;  %s1002_s9 = smov %s748_s10 }
 0x2e1   : > { %s1003_s10 = smov %s752_s11  ;;  %s1004_s11 = smov %s813_s18 }
 0x2e2   : > { %s1005_s12 = smov %s802_s15  ;;  %14 = sbr.rel (!%p12_p3) target bundleno = 3 (0x3), region = 63 }
 0x2e9   :  { %444 = vsyncpa [#allocation3], 1 }
 0x2ea   :  { %446 = vsyncpa [#allocation3 + $0x1], 1 }

</bundles_post_ra>
